<compile_context>
chip_gen: v7x
topology: tpu7x:2x2x1
jax: 0.10.0
libtpu: 0.0.40
codegen_flags: <defaults>
</compile_context>

<pallas_src>
import math
import functools

import jax
import jax.numpy as jnp
from jax.experimental import pallas as pl
from jax.experimental.pallas import tpu as pltpu


def _gelu_tanh(x):
    # PyTorch nn.GELU(approximate='tanh')
    c = math.sqrt(2.0 / math.pi)
    return 0.5 * x * (1.0 + jnp.tanh(c * (x + 0.044715 * (x * x * x))))


def _prevproj_kernel(x_ref, gamma_ref, beta_ref, w1_ref, b1_ref, w2_ref, b2_ref,
                     o_ref, xn_scr, acc_scr, *, eps):
    j = pl.program_id(1)  # mlp-hidden chunk index (reduction axis)

    @pl.when(j == 0)
    def _init():
        # LayerNorm over the hidden (last) axis, stats in f32, once per row tile.
        x = x_ref[...].astype(jnp.float32)
        mu = jnp.mean(x, axis=-1, keepdims=True)
        var = jnp.mean(jnp.square(x - mu), axis=-1, keepdims=True)
        xn = (x - mu) * jax.lax.rsqrt(var + eps)
        xn = xn * gamma_ref[...].astype(jnp.float32) + beta_ref[...].astype(jnp.float32)
        # Cache in the MXU operand (weight) dtype: cast once per row tile.
        xn_scr[...] = xn.astype(xn_scr.dtype)
        # Seed the f32 accumulator with the residual + final bias.
        acc_scr[...] = x + b2_ref[...].astype(jnp.float32)

    # One Hm chunk of the MLP:  h = gelu(xn @ W1[:, blk] + b1[blk])
    #                           acc += h @ W2[blk, :]
    h = jnp.dot(xn_scr[...], w1_ref[...], preferred_element_type=jnp.float32)
    h = _gelu_tanh(h + b1_ref[...].astype(jnp.float32))
    acc_scr[...] += jnp.dot(h.astype(w2_ref.dtype), w2_ref[...],
                            preferred_element_type=jnp.float32)

    @pl.when(j == pl.num_programs(1) - 1)
    def _finalize():
        o_ref[...] = acc_scr[...].astype(o_ref.dtype)


def _round_up(a, b):
    return (a + b - 1) // b * b


def _pick_hm_chunk(hm, target=512):
    """Largest chunk <= target that divides Hm (keeps W1/W2 blocks streamable)."""
    if hm <= target:
        return hm
    for c in (512, 256, 128):
        if hm % c == 0:
            return c
    return hm


def _build_pallas_call(n_pad, H, Hm, tm, thm, compute_dtype, out_dtype, eps,
                       vmem_limit_bytes):
    kernel = functools.partial(_prevproj_kernel, eps=eps)
    grid = (n_pad // tm, Hm // thm)
    return pl.pallas_call(
        kernel,
        out_shape=jax.ShapeDtypeStruct((n_pad, H), out_dtype),
        grid_spec=pltpu.PrefetchScalarGridSpec(
            num_scalar_prefetch=0,
            grid=grid,
            in_specs=[
                pl.BlockSpec((tm, H), lambda i, j: (i, 0)),    # x row tile
                pl.BlockSpec((1, H), lambda i, j: (0, 0)),     # gamma
                pl.BlockSpec((1, H), lambda i, j: (0, 0)),     # beta
                pl.BlockSpec((H, thm), lambda i, j: (0, j)),   # W1 chunk (streamed)
                pl.BlockSpec((1, thm), lambda i, j: (0, j)),   # b1 chunk
                pl.BlockSpec((thm, H), lambda i, j: (j, 0)),   # W2 chunk (streamed)
                pl.BlockSpec((1, H), lambda i, j: (0, 0)),     # b2
            ],
            out_specs=pl.BlockSpec((tm, H), lambda i, j: (i, 0)),
            scratch_shapes=[
                pltpu.VMEM((tm, H), compute_dtype),  # cached LayerNorm output
                pltpu.VMEM((tm, H), jnp.float32),    # f32 accumulator (residual + MLP)
            ],
        ),
        compiler_params=pltpu.CompilerParams(
            dimension_semantics=("parallel", "arbitrary"),
            vmem_limit_bytes=vmem_limit_bytes,
        ),
    )


def prevproj_forward(x, params, *, eps=1e-6, tm=256, hm_chunk=None,
                     vmem_limit_bytes=56 * 1024 * 1024):
    """x: (B, S, H).  params: dict with gamma, beta, w1 (H,Hm), b1, w2 (Hm,H), b2."""
    B, S, H = x.shape
    Hm = params["w1"].shape[1]
    N = B * S

    # Clamp the row tile for tiny inputs (sublane multiple of 8), pad rows.
    tm_eff = min(tm, _round_up(N, 8))
    n_pad = _round_up(N, tm_eff)
    thm = hm_chunk if hm_chunk is not None else _pick_hm_chunk(Hm)
    assert Hm % thm == 0, "mlp hidden dim must be divisible by the chunk size"

    x2d = x.reshape(N, H)
    if n_pad != N:
        x2d = jnp.pad(x2d, ((0, n_pad - N), (0, 0)))

    gamma = params["gamma"].reshape(1, H)
    beta = params["beta"].reshape(1, H)
    w1 = params["w1"]            # (H, Hm)
    b1 = params["b1"].reshape(1, Hm)
    w2 = params["w2"]            # (Hm, H)
    b2 = params["b2"].reshape(1, H)

    call = _build_pallas_call(n_pad, H, Hm, tm_eff, thm, w1.dtype, x.dtype, eps,
                              vmem_limit_bytes)
    out2d = call(x2d, gamma, beta, w1, b1, w2, b2)
    return out2d[:N].reshape(B, S, H)


def init_prevproj_params(key, hidden_size, dtype=jnp.float32):
    """Deterministic synthetic parameters matching PrevProj's shapes."""
    mlp_hidden = int(hidden_size * 4)
    k1, k2, k3, k4, k5, k6 = jax.random.split(key, 6)
    gamma = 1.0 + 0.05 * jax.random.normal(k1, (hidden_size,), jnp.float32)
    beta = 0.05 * jax.random.normal(k2, (hidden_size,), jnp.float32)
    s1 = 1.0 / math.sqrt(hidden_size)
    s2 = 1.0 / math.sqrt(mlp_hidden)
    w1 = (s1 * jax.random.normal(k3, (hidden_size, mlp_hidden), jnp.float32)).astype(dtype)
    b1 = (s1 * jax.random.normal(k4, (mlp_hidden,), jnp.float32)).astype(dtype)
    w2 = (s2 * jax.random.normal(k5, (mlp_hidden, hidden_size), jnp.float32)).astype(dtype)
    b2 = (s2 * jax.random.normal(k6, (hidden_size,), jnp.float32)).astype(dtype)
    return dict(gamma=gamma, beta=beta, w1=w1, b1=b1, w2=w2, b2=b2)


def prevproj_reference(x, params, eps=1e-6):
    """Pure-JAX f32 reference of the PyTorch forward."""
    xf = x.astype(jnp.float32)
    mu = jnp.mean(xf, axis=-1, keepdims=True)
    var = jnp.mean(jnp.square(xf - mu), axis=-1, keepdims=True)
    xn = (xf - mu) * jax.lax.rsqrt(var + eps)
    xn = xn * params["gamma"].astype(jnp.float32) + params["beta"].astype(jnp.float32)
    h = _gelu_tanh(xn @ params["w1"].astype(jnp.float32) + params["b1"].astype(jnp.float32))
    y = h @ params["w2"].astype(jnp.float32) + params["b2"].astype(jnp.float32)
    return (y + xf).astype(x.dtype)


if __name__ == "__main__":
    key = jax.random.PRNGKey(0)
    kx, kp, kx2, kp2 = jax.random.split(key, 4)

    # --- Main check: small shape, lane-dense hidden (H multiple of 128) ---
    B, S, H = 2, 8, 128          # mlp hidden = 512 (single Hm chunk)
    x = jax.random.normal(kx, (B, S, H), jnp.float32)
    params = init_prevproj_params(kp, H)

    out = jax.block_until_ready(prevproj_forward(x, params))
    ref = prevproj_reference(x, params)
    assert out.shape == x.shape and out.dtype == x.dtype
    assert jnp.allclose(out, ref, atol=1e-4, rtol=1e-4), "f32 mismatch vs reference"

    # --- Multi-tile / multi-chunk / padded path (N not divisible by tm) ---
    B2, S2, H2 = 2, 300, 256     # N=600 -> padded to 768; Hm=1024 -> 2 chunks
    x2 = jax.random.normal(kx2, (B2, S2, H2), jnp.float32)
    params2 = init_prevproj_params(kp2, H2)
    out2 = jax.block_until_ready(prevproj_forward(x2, params2))
    ref2 = prevproj_reference(x2, params2)
    assert jnp.allclose(out2, ref2, atol=1e-3, rtol=1e-3), "chunked path mismatch"

    # --- bf16 weights exercise the bf16 MXU path (f32 accumulation) ---
    params_bf16 = dict(params)
    for k in ("w1", "b1", "w2", "b2"):
        params_bf16[k] = params[k].astype(jnp.bfloat16)
    out_bf16 = jax.block_until_ready(prevproj_forward(x, params_bf16))
    ref_bf16 = prevproj_reference(x, {k: v.astype(jnp.float32)
                                      for k, v in params_bf16.items()})
    assert jnp.allclose(out_bf16, ref_bf16, atol=5e-2, rtol=5e-2), "bf16 path mismatch"

    print("KERNEL_OK")
</pallas_src>

<mosaic_0001>
module attributes {stable_mosaic.version = 11 : i64} {
  func.func @_prevproj_kernel(%arg0: i32, %arg1: i32, %arg2: memref<16x128xf32, #tpu.memory_space<vmem>>, %arg3: memref<1x128xf32, #tpu.memory_space<vmem>>, %arg4: memref<1x128xf32, #tpu.memory_space<vmem>>, %arg5: memref<128x512xf32, #tpu.memory_space<vmem>>, %arg6: memref<1x512xf32, #tpu.memory_space<vmem>>, %arg7: memref<512x128xf32, #tpu.memory_space<vmem>>, %arg8: memref<1x128xf32, #tpu.memory_space<vmem>>, %arg9: memref<16x128xf32, #tpu.memory_space<vmem>>, %arg10: memref<16x128xf32, #tpu.memory_space<vmem>>, %arg11: memref<16x128xf32, #tpu.memory_space<vmem>>) attributes {dimension_semantics = [#tpu.dimension_semantics<parallel>, #tpu.dimension_semantics<arbitrary>], iteration_bounds = array<i64: 1, 1>, scalar_prefetch = 0 : i64, scratch_operands = 2 : i64, tpu.core_type = #tpu.core_type<tc>, window_params = [{transform_indices = @transform_0, window_bounds = array<i64: 16, 128>}, {pipeline_mode = #tpu.pipeline_mode<synchronous>, transform_indices = @transform_1, window_bounds = array<i64: 1, 128>}, {pipeline_mode = #tpu.pipeline_mode<synchronous>, transform_indices = @transform_2, window_bounds = array<i64: 1, 128>}, {transform_indices = @transform_3, window_bounds = array<i64: 128, 512>}, {transform_indices = @transform_4, window_bounds = array<i64: 1, 512>}, {transform_indices = @transform_5, window_bounds = array<i64: 512, 128>}, {pipeline_mode = #tpu.pipeline_mode<synchronous>, transform_indices = @transform_6, window_bounds = array<i64: 1, 128>}, {transform_indices = @transform_7, window_bounds = array<i64: 16, 128>}]} {
    %c0_i32 = arith.constant 0 : i32
    %0 = arith.cmpi eq, %arg1, %c0_i32 : i32
    %1 = arith.extui %0 : i1 to i32
    %c0_i32_0 = arith.constant 0 : i32
    %2 = arith.cmpi ne, %1, %c0_i32_0 : i32
    scf.if %2 {
      %c0_19 = arith.constant 0 : index
      %c0_20 = arith.constant 0 : index
      %30 = vector.load %arg2[%c0_19, %c0_20] : memref<16x128xf32, #tpu.memory_space<vmem>>, vector<16x128xf32>
      %cst_21 = arith.constant dense<0.000000e+00> : vector<16xf32>
      %31 = vector.multi_reduction <add>, %30, %cst_21 [1] : vector<16x128xf32> to vector<16xf32>
      %32 = vector.shape_cast %31 : vector<16xf32> to vector<16x1xf32>
      %cst_22 = arith.constant 1.280000e+02 : f32
      %33 = vector.broadcast %cst_22 : f32 to vector<16x1xf32>
      %34 = arith.divf %32, %33 : vector<16x1xf32>
      %35 = vector.broadcast %34 : vector<16x1xf32> to vector<16x128xf32>
      %36 = arith.subf %30, %35 : vector<16x128xf32>
      %37 = arith.mulf %36, %36 : vector<16x128xf32>
      %cst_23 = arith.constant dense<0.000000e+00> : vector<16xf32>
      %38 = vector.multi_reduction <add>, %37, %cst_23 [1] : vector<16x128xf32> to vector<16xf32>
      %39 = vector.shape_cast %38 : vector<16xf32> to vector<16x1xf32>
      %cst_24 = arith.constant 1.280000e+02 : f32
      %40 = vector.broadcast %cst_24 : f32 to vector<16x1xf32>
      %41 = arith.divf %39, %40 : vector<16x1xf32>
      %42 = vector.broadcast %34 : vector<16x1xf32> to vector<16x128xf32>
      %43 = arith.subf %30, %42 : vector<16x128xf32>
      %cst_25 = arith.constant 9.99999997E-7 : f32
      %44 = vector.broadcast %cst_25 : f32 to vector<16x1xf32>
      %45 = arith.addf %41, %44 : vector<16x1xf32>
      %46 = math.rsqrt %45 : vector<16x1xf32>
      %47 = vector.broadcast %46 : vector<16x1xf32> to vector<16x128xf32>
      %48 = arith.mulf %43, %47 : vector<16x128xf32>
      %c0_26 = arith.constant 0 : index
      %c0_27 = arith.constant 0 : index
      %49 = vector.load %arg3[%c0_26, %c0_27] : memref<1x128xf32, #tpu.memory_space<vmem>>, vector<1x128xf32>
      %50 = vector.broadcast %49 : vector<1x128xf32> to vector<16x128xf32>
      %51 = arith.mulf %48, %50 : vector<16x128xf32>
      %c0_28 = arith.constant 0 : index
      %c0_29 = arith.constant 0 : index
      %52 = vector.load %arg4[%c0_28, %c0_29] : memref<1x128xf32, #tpu.memory_space<vmem>>, vector<1x128xf32>
      %53 = vector.broadcast %52 : vector<1x128xf32> to vector<16x128xf32>
      %54 = arith.addf %51, %53 : vector<16x128xf32>
      %c0_30 = arith.constant 0 : index
      %c0_31 = arith.constant 0 : index
      %55 = vector.load %arg10[%c0_30, %c0_31] : memref<16x128xf32, #tpu.memory_space<vmem>>, vector<16x128xf32>
      tpu.vector_store %arg10[%c0_30, %c0_31], %54 {strides = array<i32>} : memref<16x128xf32, #tpu.memory_space<vmem>>, vector<16x128xf32>,
      %c0_32 = arith.constant 0 : index
      %c0_33 = arith.constant 0 : index
      %56 = vector.load %arg8[%c0_32, %c0_33] : memref<1x128xf32, #tpu.memory_space<vmem>>, vector<1x128xf32>
      %57 = vector.broadcast %56 : vector<1x128xf32> to vector<16x128xf32>
      %58 = arith.addf %30, %57 : vector<16x128xf32>
      %c0_34 = arith.constant 0 : index
      %c0_35 = arith.constant 0 : index
      %59 = vector.load %arg11[%c0_34, %c0_35] : memref<16x128xf32, #tpu.memory_space<vmem>>, vector<16x128xf32>
      tpu.vector_store %arg11[%c0_34, %c0_35], %58 {strides = array<i32>} : memref<16x128xf32, #tpu.memory_space<vmem>>, vector<16x128xf32>,
    } else {
    }
    %c0 = arith.constant 0 : index
    %c0_1 = arith.constant 0 : index
    %3 = vector.load %arg10[%c0, %c0_1] : memref<16x128xf32, #tpu.memory_space<vmem>>, vector<16x128xf32>
    %c0_2 = arith.constant 0 : index
    %c0_3 = arith.constant 0 : index
    %4 = vector.load %arg5[%c0_2, %c0_3] : memref<128x512xf32, #tpu.memory_space<vmem>>, vector<128x512xf32>
    %cst = arith.constant dense<0.000000e+00> : vector<16x512xf32>
    %5 = tpu.matmul %3, %4, %cst {dimension_numbers = #tpu.dot_dimension_numbers<[1], [0], [0], [1], [0, 0, 1, 1], [], []>} : vector<16x128xf32>, vector<128x512xf32>, vector<16x512xf32> -> vector<16x512xf32>
    %c0_4 = arith.constant 0 : index
    %c0_5 = arith.constant 0 : index
    %6 = vector.load %arg6[%c0_4, %c0_5] : memref<1x512xf32, #tpu.memory_space<vmem>>, vector<1x512xf32>
    %7 = vector.broadcast %6 : vector<1x512xf32> to vector<16x512xf32>
    %8 = arith.addf %5, %7 : vector<16x512xf32>
    %cst_6 = arith.constant 5.000000e-01 : f32
    %9 = vector.broadcast %cst_6 : f32 to vector<16x512xf32>
    %10 = arith.mulf %9, %8 : vector<16x512xf32>
    %11 = arith.mulf %8, %8 : vector<16x512xf32>
    %12 = arith.mulf %11, %8 : vector<16x512xf32>
    %cst_7 = arith.constant 4.471500e-02 : f32
    %13 = vector.broadcast %cst_7 : f32 to vector<16x512xf32>
    %14 = arith.mulf %13, %12 : vector<16x512xf32>
    %15 = arith.addf %8, %14 : vector<16x512xf32>
    %cst_8 = arith.constant 0.797884583 : f32
    %16 = vector.broadcast %cst_8 : f32 to vector<16x512xf32>
    %17 = arith.mulf %16, %15 : vector<16x512xf32>
    %18 = math.tanh %17 : vector<16x512xf32>
    %cst_9 = arith.constant 1.000000e+00 : f32
    %19 = vector.broadcast %cst_9 : f32 to vector<16x512xf32>
    %20 = arith.addf %19, %18 : vector<16x512xf32>
    %21 = arith.mulf %10, %20 : vector<16x512xf32>
    %c0_10 = arith.constant 0 : index
    %c0_11 = arith.constant 0 : index
    %22 = vector.load %arg11[%c0_10, %c0_11] : memref<16x128xf32, #tpu.memory_space<vmem>>, vector<16x128xf32>
    %c0_12 = arith.constant 0 : index
    %c0_13 = arith.constant 0 : index
    %23 = vector.load %arg7[%c0_12, %c0_13] : memref<512x128xf32, #tpu.memory_space<vmem>>, vector<512x128xf32>
    %cst_14 = arith.constant dense<0.000000e+00> : vector<16x128xf32>
    %24 = tpu.matmul %21, %23, %cst_14 {dimension_numbers = #tpu.dot_dimension_numbers<[1], [0], [0], [1], [0, 0, 1, 1], [], []>} : vector<16x512xf32>, vector<512x128xf32>, vector<16x128xf32> -> vector<16x128xf32>
    %25 = arith.addf %22, %24 : vector<16x128xf32>
    %c0_15 = arith.constant 0 : index
    %c0_16 = arith.constant 0 : index
    %26 = vector.load %arg11[%c0_15, %c0_16] : memref<16x128xf32, #tpu.memory_space<vmem>>, vector<16x128xf32>
    tpu.vector_store %arg11[%c0_15, %c0_16], %25 {strides = array<i32>} : memref<16x128xf32, #tpu.memory_space<vmem>>, vector<16x128xf32>,
    %c0_i32_17 = arith.constant 0 : i32
    %27 = arith.cmpi eq, %arg1, %c0_i32_17 : i32
    %28 = arith.extui %27 : i1 to i32
    %c0_i32_18 = arith.constant 0 : i32
    %29 = arith.cmpi ne, %28, %c0_i32_18 : i32
    scf.if %29 {
      %c0_19 = arith.constant 0 : index
      %c0_20 = arith.constant 0 : index
      %30 = vector.load %arg11[%c0_19, %c0_20] : memref<16x128xf32, #tpu.memory_space<vmem>>, vector<16x128xf32>
      %c0_21 = arith.constant 0 : index
      %c0_22 = arith.constant 0 : index
      %31 = vector.load %arg9[%c0_21, %c0_22] : memref<16x128xf32, #tpu.memory_space<vmem>>, vector<16x128xf32>
      tpu.vector_store %arg9[%c0_21, %c0_22], %30 {strides = array<i32>} : memref<16x128xf32, #tpu.memory_space<vmem>>, vector<16x128xf32>,
    } else {
    }
    return
  }
  func.func @transform_0(%arg0: i32, %arg1: i32) -> (i32, i32) {
    %c0_i32 = arith.constant 0 : i32
    %c0_i32_0 = arith.constant 0 : i32
    return %arg0, %c0_i32 : i32, i32
  }
  func.func @transform_1(%arg0: i32, %arg1: i32) -> (i32, i32) {
    %c0_i32 = arith.constant 0 : i32
    %c0_i32_0 = arith.constant 0 : i32
    %c0_i32_1 = arith.constant 0 : i32
    return %c0_i32, %c0_i32_0 : i32, i32
  }
  func.func @transform_2(%arg0: i32, %arg1: i32) -> (i32, i32) {
    %c0_i32 = arith.constant 0 : i32
    %c0_i32_0 = arith.constant 0 : i32
    %c0_i32_1 = arith.constant 0 : i32
    return %c0_i32, %c0_i32_0 : i32, i32
  }
  func.func @transform_3(%arg0: i32, %arg1: i32) -> (i32, i32) {
    %c0_i32 = arith.constant 0 : i32
    %c0_i32_0 = arith.constant 0 : i32
    return %c0_i32, %arg1 : i32, i32
  }
  func.func @transform_4(%arg0: i32, %arg1: i32) -> (i32, i32) {
    %c0_i32 = arith.constant 0 : i32
    %c0_i32_0 = arith.constant 0 : i32
    return %c0_i32, %arg1 : i32, i32
  }
  func.func @transform_5(%arg0: i32, %arg1: i32) -> (i32, i32) {
    %c0_i32 = arith.constant 0 : i32
    %c0_i32_0 = arith.constant 0 : i32
    return %arg1, %c0_i32 : i32, i32
  }
  func.func @transform_6(%arg0: i32, %arg1: i32) -> (i32, i32) {
    %c0_i32 = arith.constant 0 : i32
    %c0_i32_0 = arith.constant 0 : i32
    %c0_i32_1 = arith.constant 0 : i32
    return %c0_i32, %c0_i32_0 : i32, i32
  }
  func.func @transform_7(%arg0: i32, %arg1: i32) -> (i32, i32) {
    %c0_i32 = arith.constant 0 : i32
    %c0_i32_0 = arith.constant 0 : i32
    return %arg0, %c0_i32 : i32, i32
  }
}

</mosaic_0001>

<bundles_post_ra>
// kernel: tpu_custom_call.1
= control target key start
LH: loop header
LB: loop body
LE: loop exit
PB: predicated region body
PF: predicated region fallthrough
CT: control target
= control target key end

     0   :  { %12 = vsyncpa [#allocation5], 0  ;;  %s1215_s0 = inlined_call_operand.hbm [shape: f32[16,128], index: 0, kind: input, shape index: {}]   ;;  %s1216_s1 = inlined_call_operand.vmem [shape: f32[1,128], index: 1, kind: input, shape index: {}]   ;;  %s1217_s2 = inlined_call_operand.vmem [shape: f32[1,128], index: 2, kind: input, shape index: {}]   ;;  %s1218_s3 = inlined_call_operand.hbm [shape: f32[128,512], index: 3, kind: input, shape index: {}]   ;;  %s1219_s4 = inlined_call_operand.vmem [shape: f32[1,512], index: 4, kind: input, shape index: {}]   ;;  %s1220_s5 = inlined_call_operand.hbm [shape: f32[512,128], index: 5, kind: input, shape index: {}]   ;;  %s1221_s6 = inlined_call_operand.vmem [shape: f32[1,128], index: 6, kind: input, shape index: {}]   ;;  %s1222_s7 = inlined_call_operand.hbm [shape: f32[16,128], index: 7, kind: output, shape index: {}]  }
   0x1   :  { %13 = vsyncpa [#allocation8], 0 }
   0x2   :  { %14 = vsyncpa [#allocation6], 0  ;;  %s1017_s24 = smov [#allocation7]   ;;  %s923_s28 = scalar_lea.hbm %s1218_s3, 8192 }
   0x3   :  { %s36_s25 = sshll.u32 %s1017_s24, 4  ;;  %p924_p0 = scmp.ne.s32.totalorder %s1218_s3, %s923_s28  ;;  %s37_s25 = int_to_ptr.vmem [resolvable:$true] %s36_s25 }
   0x4   :  { %p927_p1 = scmp.lt.u32.totalorder %s923_s28, %s1218_s3 }
   0x6   :  { %p929_p2 = pnand %p927_p1, %p924_p0 }
   0x8   :  { %932 = shalt.err (!%p929_p2)
}
   0x9   :  { %s933_s10 = scalar_lea.vmem %s37_s25, 8192  ;;  %p938_p4 = scmp.lt.s32.totalorder %s37_s25, %s37_s25 }
   0xa   :  { %p934_p3 = scmp.ne.s32.totalorder %s37_s25, %s933_s10  ;;  %p939_p5 = scmp.lt.s32.totalorder %s933_s10, %s933_s10 }
   0xc   :  { %p940_p6 = por %p939_p5, %p938_p4 }
   0xe   :  { %p941_p7 = pnand %p940_p6, %p934_p3 }
  0x10   :  { %944 = shalt.err (!%p941_p7)
}
  0x11   :  { %s1018_s11 = smov 512   ;;  %s1019_s12 = smov 32  }
  0x12   :  { %42 = dma.hbm_to_vmem [thread:$0]  %s1218_s3, 8192, %s37_s25, [#allocation8], %s1018_s11, %s1018_s11, %s1019_s12  }
  0x13   :  { %s1020_s15 = smov [#allocation4]   ;;  %s945_s19 = scalar_lea.hbm %s1215_s0, 256 }
  0x14   :  { %s20_s16 = sshll.u32 %s1020_s15, 4  ;;  %p946_p8 = scmp.ne.s32.totalorder %s1215_s0, %s945_s19  ;;  %s21_s16 = int_to_ptr.vmem [resolvable:$true] %s20_s16 }
  0x15   :  { %p949_p9 = scmp.lt.u32.totalorder %s945_s19, %s1215_s0 }
  0x17   :  { %p951_p10 = pnand %p949_p9, %p946_p8 }
  0x19   :  { %954 = shalt.err (!%p951_p10)
}
  0x1a   :  { %s955_s24 = scalar_lea.vmem %s21_s16, 256  ;;  %p960_p12 = scmp.lt.s32.totalorder %s21_s16, %s21_s16 }
  0x1b   :  { %p956_p11 = scmp.ne.s32.totalorder %s21_s16, %s955_s24  ;;  %p961_p13 = scmp.lt.s32.totalorder %s955_s24, %s955_s24 }
  0x1d   :  { %p962_p0 = por %p961_p13, %p960_p12 }
  0x1f   :  { %p963_p1 = pnand %p962_p0, %p956_p11 }
  0x21   :  { %966 = shalt.err (!%p963_p1)
}
  0x22   :  { %s1021_s3 = smov 128   ;;  %s1022_s25 = smov 8  }
  0x23   :  { %26 = dma.hbm_to_vmem [thread:$0]  %s1215_s0, 256, %s21_s16, [#allocation5], %s1021_s3, %s1021_s3, %s1022_s25  }
  0x24   :  { %s1023_s28 = smov [#allocation9]   ;;  %s967_s9 = scalar_lea.hbm %s1220_s5, 8192 }
  0x25   :  { %s50_s29 = sshll.u32 %s1023_s28, 4  ;;  %p968_p2 = scmp.ne.s32.totalorder %s1220_s5, %s967_s9  ;;  %s51_s29 = int_to_ptr.vmem [resolvable:$true] %s50_s29 }
  0x26   :  { %p971_p3 = scmp.lt.u32.totalorder %s967_s9, %s1220_s5 }
  0x28   :  { %p973_p4 = pnand %p971_p3, %p968_p2 }
  0x2a   :  { %976 = shalt.err (!%p973_p4)
}
  0x2b   :  { %s977_s14 = scalar_lea.vmem %s51_s29, 8192  ;;  %p982_p6 = scmp.lt.s32.totalorder %s51_s29, %s51_s29 }
  0x2c   :  { %p978_p5 = scmp.ne.s32.totalorder %s51_s29, %s977_s14  ;;  %p983_p7 = scmp.lt.s32.totalorder %s977_s14, %s977_s14 }
  0x2e   :  { %p984_p8 = por %p983_p7, %p982_p6 }
  0x30   :  { %p985_p9 = pnand %p984_p8, %p978_p5 }
  0x32   :  { %988 = shalt.err (!%p985_p9)
}
  0x33   :  { %56 = dma.hbm_to_vmem [thread:$0]  %s1220_s5, 8192, %s51_s29, [#allocation8], %s1021_s3, %s1021_s3, %s1022_s25  }
  0x34   :  { %1011 = dma.done.wait [#allocation5], 256  }
  0x35   :  { %1012 = vsyncadd [#allocation5], 4294967040 }
  0x36   :  { %1013 = dma.done.wait [#allocation8], 16384  }
  0x37   :  { %1014 = vsyncadd [#allocation8], 4294950912  ;;  %v1108_v0 = vld [vmem:[#allocation4] sm:$0xff]  ;;  %v1111_v1 = vld [vmem:[#allocation4 + $0x8] sm:$0xff]  ;;  %s1025_s20 = smov [#allocation10]  }
  0x38   :  { %74 = vadd.xlane.f32.xlu0 %v1108_v0  ;;  %v131_v2 = vld [vmem:[#allocation7 + $0x8] sm:$0xff]  ;;  %v133_v4 = vld [vmem:[#allocation7 + $0x18] sm:$0xff]  ;;  %v130_v7 = vld [vmem:[#allocation7] sm:$0xff] }
  0x39   :  { %v135_v3 = vld [vmem:[#allocation7 + $0x28] sm:$0xff]  ;;  %v137_v6 = vld [vmem:[#allocation7 + $0x38] sm:$0xff]  ;;  %v134_v8 = vld [vmem:[#allocation7 + $0x20] sm:$0xff] }
  0x3a   :  { %v766_v5 = vpack.c.bf16 %v135_v3, %v131_v2  ;;  %v798_v9 = vpack.c.bf16 %v137_v6, %v133_v4  ;;  %v768_v10 = vpack.c.bf16 %v134_v8, %v130_v7  ;;  %v132_v11 = vld [vmem:[#allocation7 + $0x10] sm:$0xff]  ;;  %v139_v13 = vld [vmem:[#allocation7 + $0x48] sm:$0xff]  ;;  %v141_v16 = vld [vmem:[#allocation7 + $0x58] sm:$0xff] }
  0x3b   :  { %v136_v12 = vld [vmem:[#allocation7 + $0x30] sm:$0xff]  ;;  %v143_v15 = vld [vmem:[#allocation7 + $0x68] sm:$0xff]  ;;  %v145_v17 = vld [vmem:[#allocation7 + $0x78] sm:$0xff] }
  0x3c   :  { %76 = vadd.xlane.f32.xlu0 %v1111_v1  ;;  %767 = vmatprep.subr.bf16.mxu0 %v766_v5  ;;  %v800_v14 = vpack.c.bf16 %v136_v12, %v132_v11  ;;  %v770_v18 = vpack.c.bf16 %v143_v15, %v139_v13  ;;  %v802_v19 = vpack.c.bf16 %v145_v17, %v141_v16  ;;  %v138_v20 = vld [vmem:[#allocation7 + $0x40] sm:$0xff]  ;;  %v140_v22 = vld [vmem:[#allocation7 + $0x50] sm:$0xff]  ;;  %v147_v25 = vld [vmem:[#allocation7 + $0x88] sm:$0xff] }
  0x3d   :  { %799 = vmatprep.subr.bf16.mxu1 %v798_v9  ;;  %769 = vmatpush1.bf16.msra.mxu0 %v768_v10  ;;  %v142_v21 = vld [vmem:[#allocation7 + $0x60] sm:$0xff]  ;;  %v144_v24 = vld [vmem:[#allocation7 + $0x70] sm:$0xff]  ;;  %v151_v26 = vld [vmem:[#allocation7 + $0xa8] sm:$0xff] }
  0x3e   :  { %801 = vmatpush1.bf16.msra.mxu1 %v800_v14  ;;  %v772_v23 = vpack.c.bf16 %v142_v21, %v138_v20  ;;  %771 = vmatprep.subr.bf16.mxu0 %v770_v18  ;;  %v804_v27 = vpack.c.bf16 %v144_v24, %v140_v22  ;;  %v774_v28 = vpack.c.bf16 %v151_v26, %v147_v25  ;;  %v149_v29 = vld [vmem:[#allocation7 + $0x98] sm:$0xff]  ;;  %v146_v31 = vld [vmem:[#allocation7 + $0x80] sm:$0xff]  ;;  %v148_v34 = vld [vmem:[#allocation7 + $0x90] sm:$0xff]  ;;  %v1024_v24 = vmov 0.0  }
  0x3f   :  { %803 = vmatprep.subr.bf16.mxu1 %v802_v19  ;;  %v153_v30 = vld [vmem:[#allocation7 + $0xb8] sm:$0xff]  ;;  %v150_v33 = vld [vmem:[#allocation7 + $0xa0] sm:$0xff]  ;;  %v152_v35 = vld [vmem:[#allocation7 + $0xb0] sm:$0xff]  ;;  %280 = vmatprep.mubr.f32.mxu0 %v1024_v24 }
  0x40   :  { %v806_v32 = vpack.c.bf16 %v153_v30, %v149_v29  ;;  %v776_v36 = vpack.c.bf16 %v150_v33, %v146_v31  ;;  %v808_v37 = vpack.c.bf16 %v152_v35, %v148_v34  ;;  %v155_v46 = vld [vmem:[#allocation7 + $0xc8] sm:$0xff]  ;;  %v157_v48 = vld [vmem:[#allocation7 + $0xd8] sm:$0xff]  ;;  %v154_v51 = vld [vmem:[#allocation7 + $0xc0] sm:$0xff]  ;;  %357 = vmatprep.mubr.f32.mxu1 %v1024_v24 }
  0x41   :  { %773 = vmatpush1.bf16.msra.mxu0 %v772_v23  ;;  %v159_v47 = vld [vmem:[#allocation7 + $0xe8] sm:$0xff]  ;;  %v161_v50 = vld [vmem:[#allocation7 + $0xf8] sm:$0xff]  ;;  %v158_v52 = vld [vmem:[#allocation7 + $0xe0] sm:$0xff] }
  0x42   :  { %805 = vmatpush1.bf16.msra.mxu1 %v804_v27  ;;  %775 = vmatprep.subr.bf16.mxu0 %v774_v28  ;;  %v778_v49 = vpack.c.bf16 %v159_v47, %v155_v46  ;;  %v810_v53 = vpack.c.bf16 %v161_v50, %v157_v48  ;;  %v780_v54 = vpack.c.bf16 %v158_v52, %v154_v51  ;;  %v156_v55 = vld [vmem:[#allocation7 + $0xd0] sm:$0xff]  ;;  %v163_v58 = vld [vmem:[#allocation7 + $0x108] sm:$0xff]  ;;  %v165_v60 = vld [vmem:[#allocation7 + $0x118] sm:$0xff] }
  0x43   :  { %807 = vmatprep.subr.bf16.mxu1 %v806_v32  ;;  %v160_v56 = vld [vmem:[#allocation7 + $0xf0] sm:$0xff]  ;;  %v167_v59 = vld [vmem:[#allocation7 + $0x128] sm:$0xff]  ;;  %v169_v62 = vld [vmem:[#allocation7 + $0x138] sm:$0xff] }
  0x44   :  { %v812_v57 = vpack.c.bf16 %v160_v56, %v156_v55  ;;  %v782_v61 = vpack.c.bf16 %v167_v59, %v163_v58  ;;  %v162_v63 = vld [vmem:[#allocation7 + $0x100] sm:$0xff]  ;;  %v814_v3 = vpack.c.bf16 %v169_v62, %v165_v60  ;;  %v164_v5 = vld [vmem:[#allocation7 + $0x110] sm:$0xff]  ;;  %v171_v8 = vld [vmem:[#allocation7 + $0x148] sm:$0xff] }
  0x45   :  { %777 = vmatpush1.bf16.msra.mxu0 %v776_v36  ;;  %v166_v2 = vld [vmem:[#allocation7 + $0x120] sm:$0xff]  ;;  %v168_v6 = vld [vmem:[#allocation7 + $0x130] sm:$0xff]  ;;  %v175_v9 = vld [vmem:[#allocation7 + $0x168] sm:$0xff] }
  0x46   :  { %809 = vmatpush1.bf16.msra.mxu1 %v808_v37  ;;  %779 = vmatprep.subr.bf16.mxu0 %v778_v49  ;;  %v784_v4 = vpack.c.bf16 %v166_v2, %v162_v63  ;;  %v816_v7 = vpack.c.bf16 %v168_v6, %v164_v5  ;;  %v173_v10 = vld [vmem:[#allocation7 + $0x158] sm:$0xff]  ;;  %v786_v11 = vpack.c.bf16 %v175_v9, %v171_v8  ;;  %v170_v13 = vld [vmem:[#allocation7 + $0x140] sm:$0xff]  ;;  %v172_v17 = vld [vmem:[#allocation7 + $0x150] sm:$0xff] }
  0x47   :  { %811 = vmatprep.subr.bf16.mxu1 %v810_v53  ;;  %v177_v12 = vld [vmem:[#allocation7 + $0x178] sm:$0xff]  ;;  %v174_v14 = vld [vmem:[#allocation7 + $0x160] sm:$0xff]  ;;  %v176_v18 = vld [vmem:[#allocation7 + $0x170] sm:$0xff] }
  0x48   :  { %v818_v15 = vpack.c.bf16 %v177_v12, %v173_v10  ;;  %v788_v16 = vpack.c.bf16 %v174_v14, %v170_v13  ;;  %v179_v19 = vld [vmem:[#allocation7 + $0x188] sm:$0xff]  ;;  %v820_v20 = vpack.c.bf16 %v176_v18, %v172_v17  ;;  %v181_v22 = vld [vmem:[#allocation7 + $0x198] sm:$0xff]  ;;  %v178_v27 = vld [vmem:[#allocation7 + $0x180] sm:$0xff] }
  0x49   :  { %781 = vmatpush1.bf16.msra.mxu0 %v780_v54  ;;  %v183_v21 = vld [vmem:[#allocation7 + $0x1a8] sm:$0xff]  ;;  %v185_v23 = vld [vmem:[#allocation7 + $0x1b8] sm:$0xff]  ;;  %v182_v28 = vld [vmem:[#allocation7 + $0x1a0] sm:$0xff] }
  0x4a   :  { %813 = vmatpush1.bf16.msra.mxu1 %v812_v57  ;;  %783 = vmatprep.subr.bf16.mxu0 %v782_v61  ;;  %v790_v25 = vpack.c.bf16 %v183_v21, %v179_v19  ;;  %v822_v26 = vpack.c.bf16 %v185_v23, %v181_v22  ;;  %v180_v29 = vld [vmem:[#allocation7 + $0x190] sm:$0xff]  ;;  %v792_v30 = vpack.c.bf16 %v182_v28, %v178_v27  ;;  %v187_v32 = vld [vmem:[#allocation7 + $0x1c8] sm:$0xff]  ;;  %v189_v36 = vld [vmem:[#allocation7 + $0x1d8] sm:$0xff] }
  0x4b   :  { %815 = vmatprep.subr.bf16.mxu1 %v814_v3  ;;  %v184_v31 = vld [vmem:[#allocation7 + $0x1b0] sm:$0xff]  ;;  %v191_v33 = vld [vmem:[#allocation7 + $0x1e8] sm:$0xff]  ;;  %v193_v37 = vld [vmem:[#allocation7 + $0x1f8] sm:$0xff] }
  0x4c   :  { %v824_v34 = vpack.c.bf16 %v184_v31, %v180_v29  ;;  %v794_v35 = vpack.c.bf16 %v191_v33, %v187_v32  ;;  %v460_v47 = vld [vmem:[#allocation9 + $0x80] sm:$0xff]  ;;  %v461_v48 = vld [vmem:[#allocation9 + $0x88] sm:$0xff]  ;;  %v687_v60 = vld [vmem:[%s1216_s1] ss:$0 sm:$0xff] }
  0x4d   :  { %785 = vmatpush1.bf16.msra.mxu0 %v784_v4  ;;  %v492_v49 = vld [vmem:[#allocation9 + $0x180] sm:$0xff]  ;;  %v830_v50 = vpack.c.bf16 %v461_v48, %v460_v47  ;;  %v493_v51 = vld [vmem:[#allocation9 + $0x188] sm:$0xff]  ;;  %v688_v62 = vld [vmem:[%s1217_s2] ss:$0 sm:$0xff] }
  0x4e   :  { %817 = vmatpush1.bf16.msra.mxu1 %v816_v7  ;;  %787 = vmatprep.subr.bf16.mxu0 %v786_v11  ;;  %v862_v52 = vpack.c.bf16 %v493_v51, %v492_v49  ;;  %v444_v63 = vld [vmem:[#allocation9] sm:$0xff]  ;;  %v445_v2 = vld [vmem:[#allocation9 + $0x8] sm:$0xff]  ;;  %v462_v12 = vld [vmem:[#allocation9 + $0x90] sm:$0xff] }
  0x4f   :  { %819 = vmatprep.subr.bf16.mxu1 %v818_v15  ;;  %v476_v3 = vld [vmem:[#allocation9 + $0x100] sm:$0xff]  ;;  %v477_v4 = vld [vmem:[#allocation9 + $0x108] sm:$0xff]  ;;  %v832_v9 = vpack.c.bf16 %v445_v2, %v444_v63  ;;  %v463_v13 = vld [vmem:[#allocation9 + $0x98] sm:$0xff] }
  0x50   :  { %v864_v10 = vpack.c.bf16 %v477_v4, %v476_v3  ;;  %v494_v14 = vld [vmem:[#allocation9 + $0x190] sm:$0xff]  ;;  %v834_v15 = vpack.c.bf16 %v463_v13, %v462_v12  ;;  %v447_v17 = vld [vmem:[#allocation9 + $0x18] sm:$0xff]  ;;  %v464_v23 = vld [vmem:[#allocation9 + $0xa0] sm:$0xff] }
  0x51   :  { %789 = vmatpush1.bf16.msra.mxu0 %v788_v16  ;;  %v495_v16 = vld [vmem:[#allocation9 + $0x198] sm:$0xff]  ;;  %v497_v27 = vld [vmem:[#allocation9 + $0x1a8] sm:$0xff]  ;;  %v448_v28 = vld [vmem:[#allocation9 + $0x20] sm:$0xff] }
  0x52   :  { %821 = vmatpush1.bf16.msra.mxu1 %v820_v20  ;;  %791 = vmatprep.subr.bf16.mxu0 %v790_v25  ;;  %v866_v18 = vpack.c.bf16 %v495_v16, %v494_v14  ;;  %v478_v20 = vld [vmem:[#allocation9 + $0x110] sm:$0xff]  ;;  %v479_v21 = vld [vmem:[#allocation9 + $0x118] sm:$0xff]  ;;  %v496_v25 = vld [vmem:[#allocation9 + $0x1a0] sm:$0xff] }
  0x53   :  { %823 = vmatprep.subr.bf16.mxu1 %v822_v26  ;;  %v868_v22 = vpack.c.bf16 %v479_v21, %v478_v20  ;;  %v449_v29 = vld [vmem:[#allocation9 + $0x28] sm:$0xff]  ;;  %v480_v32 = vld [vmem:[#allocation9 + $0x120] sm:$0xff]  ;;  %v483_v47 = vld [vmem:[#allocation9 + $0x138] sm:$0xff] }
  0x54   :  { %v840_v31 = vpack.c.bf16 %v449_v29, %v448_v28  ;;  %v481_v33 = vld [vmem:[#allocation9 + $0x128] sm:$0xff]  ;;  %v468_v49 = vld [vmem:[#allocation9 + $0xc0] sm:$0xff]  ;;  %v502_v63 = vld [vmem:[#allocation9 + $0x1d0] sm:$0xff] }
  0x55   :  { %793 = vmatpush1.bf16.msra.mxu0 %v792_v30  ;;  %v870_v30 = vpack.c.bf16 %v497_v27, %v496_v25  ;;  %v500_v51 = vld [vmem:[#allocation9 + $0x1c0] sm:$0xff]  ;;  %v503_v3 = vld [vmem:[#allocation9 + $0x1d8] sm:$0xff]  ;;  %v454_v4 = vld [vmem:[#allocation9 + $0x50] sm:$0xff] }
  0x56   :  { %825 = vmatpush1.bf16.msra.mxu1 %v824_v34  ;;  %795 = vmatprep.subr.bf16.mxu0 %v794_v35  ;;  %v872_v34 = vpack.c.bf16 %v481_v33, %v480_v32  ;;  %v466_v35 = vld [vmem:[#allocation9 + $0xb0] sm:$0xff]  ;;  %v504_v12 = vld [vmem:[#allocation9 + $0x1e0] sm:$0xff]  ;;  %v505_v14 = vld [vmem:[#allocation9 + $0x1e8] sm:$0xff]  ;;  %v196_v33 = vlaneseq }
  0x57   :  { %v457_v16 = vld [vmem:[#allocation9 + $0x68] sm:$0xff]  ;;  %v474_v21 = vld [vmem:[#allocation9 + $0xf0] sm:$0xff]  ;;  %v507_v25 = vld [vmem:[#allocation9 + $0x1f8] sm:$0xff] }
  0x58   :  { %v459_v27 = vld [vmem:[#allocation9 + $0x78] sm:$0xff] }
  0xc5   :  { %v75_v38 = vpop.xlane.xlu0 %74 }
  0xc6   :  { %v79_v39 = vmul.f32 0.0078125, %v75_v38  ;;  %v186_v38 = vld [vmem:[#allocation7 + $0x1c0] sm:$0xff] }
  0xc8   :  { %v1115_v40 = vsub.f32 %v1108_v0, %v79_v39  ;;  %v826_v39 = vpack.c.bf16 %v193_v37, %v189_v36  ;;  %v467_v36 = vld [vmem:[#allocation9 + $0xb8] sm:$0xff]  ;;  %v498_v37 = vld [vmem:[#allocation9 + $0x1b0] sm:$0xff] }
  0xc9   :  { %v77_v41 = vpop.xlane.xlu0 %76 }
  0xca   :  { %v80_v42 = vmul.f32 0.0078125, %v77_v41  ;;  %v83_v43 = vmul.f32 %v1115_v40, %v1115_v40  ;;  %v190_v41 = vld [vmem:[#allocation7 + $0x1e0] sm:$0xff]  ;;  %827 = vmatprep.subr.bf16.mxu1 %v826_v39  ;;  %v499_v39 = vld [vmem:[#allocation9 + $0x1b8] sm:$0xff] }
  0xcc   :  { %v1120_v44 = vsub.f32 %v1111_v1, %v80_v42  ;;  %85 = vadd.xlane.f32.xlu1 %v83_v43  ;;  %v188_v42 = vld [vmem:[#allocation7 + $0x1d0] sm:$0xff] }
  0xcd   :  { %v192_v43 = vld [vmem:[#allocation7 + $0x1f0] sm:$0xff] }
  0xce   :  { %v84_v45 = vmul.f32 %v1120_v44, %v1120_v44  ;;  %v828_v46 = vpack.c.bf16 %v192_v43, %v188_v42  ;;  %v451_v42 = vld [vmem:[#allocation9 + $0x38] sm:$0xff]  ;;  %v874_v43 = vpack.c.bf16 %v499_v39, %v498_v37  ;;  %v194_v37 = vld [vmem:[%s1219_s4] sm:$0xf] }
  0xd0   :  { %87 = vadd.xlane.f32.xlu1 %v84_v45  ;;  %v796_v45 = vpack.c.bf16 %v190_v41, %v186_v38  ;;  %829 = vmatpush1.bf16.msra.mxu1 %v828_v46  ;;  %v842_v38 = vpack.c.bf16 %v467_v36, %v466_v35  ;;  %v450_v41 = vld [vmem:[#allocation9 + $0x30] sm:$0xff] }
  0xd1   :  { %863 = vmatprep.subr.bf16.mxu1 %v862_v52  ;;  %v482_v46 = vld [vmem:[#allocation9 + $0x130] sm:$0xff] }
  0xd2   :  { %797 = vmatpush1.bf16.msra.mxu0 %v796_v45  ;;  %v844_v45 = vpack.c.bf16 %v451_v42, %v450_v41  ;;  %v876_v48 = vpack.c.bf16 %v483_v47, %v482_v46 }
  0xd3   :  { %831 = vmatprep.subr.bf16.mxu0 %v830_v50  ;;  %v469_v50 = vld [vmem:[#allocation9 + $0xc8] sm:$0xff] }
  0xd4   :  { %v846_v52 = vpack.c.bf16 %v469_v50, %v468_v49 }
 0x159   :  { %v86_v53 = vpop.xlane.xlu1 %85 }
 0x15a   :  { %v89_v54 = vmul.f32 0.0078125, %v86_v53  ;;  %v501_v53 = vld [vmem:[#allocation9 + $0x1c8] sm:$0xff] }
 0x15c   :  { %v91_v55 = vadd.f32 1e-06, %v89_v54  ;;  %v452_v54 = vld [vmem:[#allocation9 + $0x40] sm:$0xff] }
 0x15d   :  { %v88_v56 = vpop.xlane.xlu1 %87 }
 0x15e   :  { %903 = vrsqrt.f32 %v91_v55  ;;  %v90_v57 = vmul.f32 0.0078125, %v88_v56  ;;  %v453_v55 = vld [vmem:[#allocation9 + $0x48] sm:$0xff]  ;;  %v878_v56 = vpack.c.bf16 %v501_v53, %v500_v51 }
 0x160   :  { %v92_v58 = vadd.f32 1e-06, %v90_v57  ;;  %v848_v57 = vpack.c.bf16 %v453_v55, %v452_v54 }
 0x162   :  { %905 = vrsqrt.f32 %v92_v58  ;;  %v484_v58 = vld [vmem:[#allocation9 + $0x140] sm:$0xff] }
 0x168   :  { %v904_v59 = vpop.eup %903 }
 0x169   :  { %v95_v61 = vmul.f32 %v904_v59, %v1115_v40  ;;  %v485_v59 = vld [vmem:[#allocation9 + $0x148] sm:$0xff] }
 0x16b   :  { %v104_v5 = vmul.f32 %v687_v60, %v95_v61  ;;  %v470_v61 = vld [vmem:[#allocation9 + $0xd0] sm:$0xff] }
 0x16c   :  { %v906_v6 = vpop.eup %905 }
 0x16d   :  { %v113_v7 = vadd.f32 %v688_v62, %v104_v5  ;;  %v96_v8 = vmul.f32 %v906_v6, %v1120_v44  ;;  %v446_v44 = vld [vmem:[#allocation9 + $0x10] sm:$0xff]  ;;  %v455_v5 = vld [vmem:[#allocation9 + $0x58] sm:$0xff]  ;;  %v882_v6 = vpack.c.bf16 %v503_v3, %v502_v63 }
 0x16e   :  { %v836_v19 = vpack.c.bf16 %v447_v17, %v446_v44  ;;  %v886_v44 = vpack.c.bf16 %v505_v14, %v504_v12 }
 0x16f   :  { %281 = vmatmul.mubr.f32.vlgmr.msra.gmra.mrb[0].mxu0 %v113_v7  ;;  %358 = vmatmul.mubr.f32.vlgmr.msra.gmra.mrb[0].mxu1 %v113_v7  ;;  %v105_v11 = vmul.f32 %v687_v60, %v96_v8  ;;  %v880_v60 = vpack.c.bf16 %v485_v59, %v484_v58  ;;  %v852_v7 = vpack.c.bf16 %v455_v5, %v454_v4  ;;  %v486_v8 = vld [vmem:[#allocation9 + $0x150] sm:$0xff] }
 0x170   :  { %286 = vmatprep.mubr.f32.mxu0 %v1024_v24  ;;  %363 = vmatprep.mubr.f32.mxu1 %v1024_v24  ;;  %v465_v24 = vld [vmem:[#allocation9 + $0xa8] sm:$0xff] }
 0x171   :  { %v114_v40 = vadd.f32 %v688_v62, %v105_v11  ;;  %833 = vmatpush3.bf16.msra.mxu0 %v832_v9  ;;  %865 = vmatpush3.bf16.msra.mxu1 %v864_v10  ;;  %v838_v26 = vpack.c.bf16 %v465_v24, %v464_v23  ;;  %v471_v62 = vld [vmem:[#allocation9 + $0xd8] sm:$0xff]  ;;  %v472_v11 = vld [vmem:[#allocation9 + $0xe0] sm:$0xff]  ;;  %v506_v23 = vld [vmem:[#allocation9 + $0x1f0] sm:$0xff] }
 0x172   :  { %835 = vmatprep.subr.bf16.mxu0 %v834_v15  ;;  %867 = vmatprep.subr.bf16.mxu1 %v866_v18  ;;  %v850_v2 = vpack.c.bf16 %v471_v62, %v470_v61  ;;  %v487_v9 = vld [vmem:[#allocation9 + $0x158] sm:$0xff]  ;;  %v456_v15 = vld [vmem:[#allocation9 + $0x60] sm:$0xff]  ;;  %v890_v28 = vpack.c.bf16 %v507_v25, %v506_v23 }
 0x173   :  { %287 = vmatmul.mubr.f32.gmra.mrb[2].mxu0 %v114_v40  ;;  %364 = vmatmul.mubr.f32.gmra.mrb[2].mxu1 %v114_v40  ;;  %v884_v10 = vpack.c.bf16 %v487_v9, %v486_v8  ;;  %v473_v40 = vld [vmem:[#allocation9 + $0xe8] sm:$0xff]  ;;  %v856_v17 = vpack.c.bf16 %v457_v16, %v456_v15  ;;  %v488_v18 = vld [vmem:[#allocation9 + $0x160] sm:$0xff] }
 0x174   :  { %v854_v13 = vpack.c.bf16 %v473_v40, %v472_v11 }
 0x175   :  { %837 = vmatpush3.bf16.msra.mxu0 %v836_v19  ;;  %869 = vmatpush3.bf16.msra.mxu1 %v868_v22  ;;  %v489_v19 = vld [vmem:[#allocation9 + $0x168] sm:$0xff]  ;;  %v475_v22 = vld [vmem:[#allocation9 + $0xf8] sm:$0xff] }
 0x176   :  { %839 = vmatprep.subr.bf16.mxu0 %v838_v26  ;;  %871 = vmatprep.subr.bf16.mxu1 %v870_v30  ;;  %v888_v20 = vpack.c.bf16 %v489_v19, %v488_v18  ;;  %v858_v24 = vpack.c.bf16 %v475_v22, %v474_v21  ;;  %v458_v26 = vld [vmem:[#allocation9 + $0x70] sm:$0xff] }
 0x177   :  { %v860_v29 = vpack.c.bf16 %v459_v27, %v458_v26  ;;  %v490_v30 = vld [vmem:[#allocation9 + $0x170] sm:$0xff] }
 0x179   :  { %841 = vmatpush3.bf16.msra.mxu0 %v840_v31  ;;  %873 = vmatpush3.bf16.msra.mxu1 %v872_v34  ;;  %v491_v31 = vld [vmem:[#allocation9 + $0x178] sm:$0xff]  ;;  %v197_v34 = vshrl.u32 %v196_v33, 7 }
 0x17a   :  { %843 = vmatprep.subr.bf16.mxu0 %v842_v38  ;;  %875 = vmatprep.subr.bf16.mxu1 %v874_v43  ;;  %v892_v32 = vpack.c.bf16 %v491_v31, %v490_v30 }
 0x17b   :  { %v198_v35 = vsub.s32 0, %v197_v34  ;;  %v206_v36 = vsub.s32 2, %v197_v34  ;;  %v202_v38 = vsub.s32 1, %v197_v34  ;;  %v210_v39 = vsub.s32 3, %v197_v34 }
 0x17d   :  { %845 = vmatpush3.bf16.msra.mxu0 %v844_v45  ;;  %877 = vmatpush3.bf16.msra.mxu1 %v876_v48  ;;  %v199_v41 = vrot.slane %v194_v37, %v198_v35  ;;  %v207_v42 = vrot.slane %v194_v37, %v206_v36  ;;  %v203_v43 = vrot.slane %v194_v37, %v202_v38 }
 0x17e   :  { %847 = vmatprep.subr.bf16.mxu0 %v846_v52  ;;  %879 = vmatprep.subr.bf16.mxu1 %v878_v56  ;;  %v211_v45 = vrot.slane %v194_v37, %v210_v39 }
 0x181   :  { %849 = vmatpush3.bf16.msra.mxu0 %v848_v57  ;;  %881 = vmatpush3.bf16.msra.mxu1 %v880_v60 }
 0x182   :  { %851 = vmatprep.subr.bf16.mxu0 %v850_v2  ;;  %883 = vmatprep.subr.bf16.mxu1 %v882_v6 }
 0x185   :  { %853 = vmatpush3.bf16.msra.mxu0 %v852_v7  ;;  %885 = vmatpush3.bf16.msra.mxu1 %v884_v10 }
 0x186   :  { %855 = vmatprep.subr.bf16.mxu0 %v854_v13  ;;  %887 = vmatprep.subr.bf16.mxu1 %v886_v44 }
 0x189   :  { %857 = vmatpush3.bf16.msra.mxu0 %v856_v17  ;;  %889 = vmatpush3.bf16.msra.mxu1 %v888_v20 }
 0x18a   :  { %859 = vmatprep.subr.bf16.mxu0 %v858_v24  ;;  %891 = vmatprep.subr.bf16.mxu1 %v890_v28 }
 0x18d   :  { %861 = vmatpush3.bf16.msra.mxu0 %v860_v29  ;;  %893 = vmatpush3.bf16.msra.mxu1 %v892_v32 }
 0x242   :  { %v282_v46 = vpop.f32.mrb[0].mxu0  ;;  %v359_v47 = vpop.f32.mrb[0].mxu1 }
 0x243   :  { %v1139_v48 = vadd.f32 %v282_v46, %v199_v41  ;;  %v1141_v49 = vadd.f32 %v359_v47, %v207_v42  ;;  %v284_v50 = vpop.f32.mrb[1].mxu0  ;;  %v361_v51 = vpop.f32.mrb[1].mxu1 }
 0x244   :  { %v1143_v52 = vadd.f32 %v284_v50, %v203_v43  ;;  %v1145_v53 = vadd.f32 %v361_v51, %v211_v45 }
 0x245   :  { %v378_v54 = vmul.f32 %v1139_v48, %v1139_v48  ;;  %v380_v55 = vmul.f32 %v1141_v49, %v1141_v49  ;;  %v370_v51 = vmul.f32 0.5, %v1139_v48 }
 0x246   :  { %v379_v56 = vmul.f32 %v1143_v52, %v1143_v52  ;;  %v381_v57 = vmul.f32 %v1145_v53, %v1145_v53  ;;  %v288_v58 = vpop.f32.mrb[2].mxu0  ;;  %v365_v59 = vpop.f32.mrb[2].mxu1  ;;  %v371_v46 = vmul.f32 0.5, %v1143_v52 }
 0x247   :  { %v386_v60 = vmul.f32 %v378_v54, %v1139_v48  ;;  %v388_v61 = vmul.f32 %v380_v55, %v1141_v49  ;;  %v1157_v62 = vadd.f32 %v288_v58, %v199_v41  ;;  %v1159_v63 = vadd.f32 %v365_v59, %v207_v42  ;;  %v290_v2 = vpop.f32.mrb[3].mxu0  ;;  %v367_v3 = vpop.f32.mrb[3].mxu1 }
 0x248   :  { %v387_v4 = vmul.f32 %v379_v56, %v1143_v52  ;;  %v389_v5 = vmul.f32 %v381_v57, %v1145_v53  ;;  %v1163_v6 = vadd.f32 %v290_v2, %v203_v43  ;;  %v1165_v7 = vadd.f32 %v367_v3, %v211_v45 }
 0x249   :  { %v394_v8 = vmul.f32 0.044715, %v386_v60  ;;  %v396_v9 = vmul.f32 0.044715, %v388_v61  ;;  %v382_v10 = vmul.f32 %v1157_v62, %v1157_v62  ;;  %v384_v11 = vmul.f32 %v1159_v63, %v1159_v63 }
 0x24a   :  { %v395_v40 = vmul.f32 0.044715, %v387_v4  ;;  %v397_v12 = vmul.f32 0.044715, %v389_v5  ;;  %v383_v13 = vmul.f32 %v1163_v6, %v1163_v6  ;;  %v385_v14 = vmul.f32 %v1165_v7, %v1165_v7 }
 0x24b   :  { %v402_v15 = vadd.f32 %v394_v8, %v1139_v48  ;;  %v404_v16 = vadd.f32 %v396_v9, %v1141_v49  ;;  %v390_v44 = vmul.f32 %v382_v10, %v1157_v62  ;;  %v392_v17 = vmul.f32 %v384_v11, %v1159_v63 }
 0x24c   :  { %v403_v18 = vadd.f32 %v395_v40, %v1143_v52  ;;  %v405_v19 = vadd.f32 %v397_v12, %v1145_v53  ;;  %v391_v20 = vmul.f32 %v383_v13, %v1163_v6  ;;  %v393_v21 = vmul.f32 %v385_v14, %v1165_v7 }
 0x24d   :  { %v410_v22 = vmul.f32 0.7978846, %v402_v15  ;;  %v412_v23 = vmul.f32 0.7978846, %v404_v16  ;;  %v398_v24 = vmul.f32 0.044715, %v390_v44 }
 0x24e   :  { %v411_v25 = vmul.f32 0.7978846, %v403_v18  ;;  %v413_v26 = vmul.f32 0.7978846, %v405_v19  ;;  %v400_v27 = vmul.f32 0.044715, %v392_v17 }
 0x24f   :  { %907 = vtanh.f32 %v410_v22  ;;  %v406_v28 = vadd.f32 %v398_v24, %v1157_v62  ;;  %v399_v29 = vmul.f32 0.044715, %v391_v20  ;;  %v401_v30 = vmul.f32 0.044715, %v393_v21 }
 0x250   :  { %909 = vtanh.f32 %v412_v23  ;;  %v408_v31 = vadd.f32 %v400_v27, %v1159_v63  ;;  %v373_v54 = vmul.f32 0.5, %v1145_v53  ;;  %v372_v57 = vmul.f32 0.5, %v1141_v49 }
 0x251   :  { %v414_v32 = vmul.f32 0.7978846, %v406_v28  ;;  %v407_v33 = vadd.f32 %v399_v29, %v1163_v6  ;;  %v409_v34 = vadd.f32 %v401_v30, %v1165_v7  ;;  %911 = vtanh.f32 %v411_v25 }
 0x252   :  { %v416_v35 = vmul.f32 0.7978846, %v408_v31  ;;  %913 = vtanh.f32 %v413_v26  ;;  %v375_v52 = vmul.f32 0.5, %v1163_v6  ;;  %v377_v48 = vmul.f32 0.5, %v1165_v7  ;;  %v689_v6 = vld [vmem:[%s1221_s6] ss:$0 sm:$0xff] }
 0x253   :  { %v415_v36 = vmul.f32 0.7978846, %v407_v33  ;;  %v417_v37 = vmul.f32 0.7978846, %v409_v34  ;;  %915 = vtanh.f32 %v414_v32  ;;  %v374_v9 = vmul.f32 0.5, %v1157_v62  ;;  %s674_s6 = sshll.u32 %s1025_s20, 4  ;;  %s675_s6 = int_to_ptr.vmem [resolvable:$true] %s674_s6 }
 0x254   :  { %917 = vtanh.f32 %v416_v35  ;;  %v376_v10 = vmul.f32 0.5, %v1159_v63  ;;  %v124_v16 = vadd.f32 %v689_v6, %v1108_v0  ;;  %v125_v22 = vadd.f32 %v689_v6, %v1111_v1  ;;  %s989_s21 = scalar_lea.vmem %s675_s6, 256  ;;  %p994_p11 = scmp.lt.s32.totalorder %s675_s6, %s675_s6 }
 0x255   :  { %919 = vtanh.f32 %v415_v36  ;;  %p990_p10 = scmp.ne.s32.totalorder %s675_s6, %s989_s21  ;;  %p995_p12 = scmp.lt.s32.totalorder %s989_s21, %s989_s21 }
 0x256   :  { %921 = vtanh.f32 %v417_v37 }
 0x257   :  { %p996_p13 = por %p995_p12, %p994_p11 }
 0x259   :  { %v908_v38 = vpop.eup %907  ;;  %p997_p0 = pnand %p996_p13, %p990_p10 }
 0x25a   :  { %v910_v39 = vpop.eup %909  ;;  %v426_v42 = vadd.f32 1.0, %v908_v38 }
 0x25b   :  { %v912_v41 = vpop.eup %911  ;;  %v428_v45 = vadd.f32 1.0, %v910_v39 }
 0x25c   :  { %v914_v43 = vpop.eup %913  ;;  %v427_v47 = vadd.f32 1.0, %v912_v41  ;;  %v434_v60 = vmul.f32 %v426_v42, %v370_v51 }
 0x25d   :  { %v916_v50 = vpop.eup %915  ;;  %v429_v55 = vadd.f32 1.0, %v914_v43  ;;  %v436_v4 = vmul.f32 %v428_v45, %v372_v57 }
 0x25e   :  { %v918_v56 = vpop.eup %917  ;;  %v435_v58 = vmul.f32 %v427_v47, %v371_v46  ;;  %v430_v2 = vadd.f32 1.0, %v916_v50 }
 0x25f   :  { %v920_v59 = vpop.eup %919  ;;  %v437_v61 = vmul.f32 %v429_v55, %v373_v54  ;;  %v432_v8 = vadd.f32 1.0, %v918_v56 }
 0x260   :  { %v922_v3 = vpop.eup %921  ;;  %572 = vmatprep.mubr.f32.mxu0 %v435_v58  ;;  %v431_v5 = vadd.f32 1.0, %v920_v59  ;;  %v438_v40 = vmul.f32 %v430_v2, %v374_v9 }
 0x261   :  { %647 = vmatprep.mubr.f32.mxu1 %v437_v61  ;;  %573 = vmatmul.mubr.f32.vlgmr.msra.gmra.mrb[4].mxu0 %v434_v60  ;;  %v433_v53 = vadd.f32 1.0, %v922_v3  ;;  %v440_v12 = vmul.f32 %v432_v8, %v376_v10 }
 0x262   :  { %648 = vmatmul.mubr.f32.vlgmr.msra.gmra.mrb[4].mxu1 %v436_v4  ;;  %v439_v49 = vmul.f32 %v431_v5, %v375_v52 }
 0x263   :  { %v441_v11 = vmul.f32 %v433_v53, %v377_v48 }
 0x264   :  { %577 = vmatprep.mubr.f32.mxu0 %v439_v49 }
 0x265   :  { %652 = vmatprep.mubr.f32.mxu1 %v441_v11  ;;  %578 = vmatmul.mubr.f32.gmra.mrb[6].mxu0 %v438_v40 }
 0x266   :  { %653 = vmatmul.mubr.f32.gmra.mrb[6].mxu1 %v440_v12 }
 0x334   :  { %v722_v13 = vpop.f32.mrb[4].mxu0 }
 0x335   :  { %v760_v7 = vpop.f32.mrb[4].mxu1  ;;  %v723_v14 = vpop.f32.mrb[5].mxu0 }
 0x336   :  { %v724_v15 = vadd.f32 %v723_v14, %v722_v13  ;;  %v761_v62 = vpop.f32.mrb[5].mxu1 }
 0x337   :  { %v762_v44 = vadd.f32 %v761_v62, %v760_v7 }
 0x338   :  { %v725_v63 = vpop.f32.mrb[6].mxu0 }
 0x339   :  { %v650_v17 = vadd.f32 %v762_v44, %v724_v15  ;;  %v763_v18 = vpop.f32.mrb[6].mxu1  ;;  %v726_v19 = vpop.f32.mrb[7].mxu0 }
 0x33a   :  { %v727_v20 = vadd.f32 %v726_v19, %v725_v63  ;;  %v764_v21 = vpop.f32.mrb[7].mxu1 }
 0x33b   :  { %v658_v23 = vadd.f32 %v650_v17, %v124_v16  ;;  %v765_v24 = vadd.f32 %v764_v21, %v763_v18 }
 0x33d   :  { %667 = vst [vmem:[#allocation10] sm:$0xff] %v658_v23  ;;  %v655_v25 = vadd.f32 %v765_v24, %v727_v20 }
 0x33f   :  { %v659_v26 = vadd.f32 %v655_v25, %v125_v22 }
 0x341   :  { %668 = vst [vmem:[#allocation10 + $0x8] sm:$0xff] %v659_v26 }
 0x342   :  { %1000 = shalt.err (!%p997_p0)
}
 0x343   :  { %s1001_s24 = scalar_lea.hbm %s1222_s7, 256 }
 0x344   :  { %p1002_p1 = scmp.ne.s32.totalorder %s1222_s7, %s1001_s24  ;;  %p1005_p2 = scmp.lt.u32.totalorder %s1001_s24, %s1222_s7 }
 0x346   :  { %p1007_p3 = pnand %p1005_p2, %p1002_p1 }
 0x348   :  { %1010 = shalt.err (!%p1007_p3)
}
 0x349   :  { %680 = dma.vmem_to_hbm [thread:$0]  %s675_s6, 256, %s1222_s7, [#allocation6], %s1021_s3, %s1021_s3, %s1022_s25  }
 0x34a   :  { %1015 = dma.done.wait [#allocation6], 256  }
 0x34b   :  { %1016 = vsyncadd [#allocation6], 4294967040 }
 0x34c   :  { %684 = vsyncpa [#allocation5], 1 }
 0x34d   :  { %685 = vsyncpa [#allocation8], 1 }
 0x34e   :  { %686 = vsyncpa [#allocation6], 1 }

</bundles_post_ra>
